<compile_context>
chip_gen: v7x
topology: tpu7x:2x2x1
jax: 0.10.0
libtpu: 0.0.40
codegen_flags: <defaults>
</compile_context>

<pallas_src>
import functools
import math

import jax
import jax.numpy as jnp
from jax.experimental import pallas as pl
from jax.experimental.pallas import tpu as pltpu


def _default_vmem_limit_bytes():
    """~75% of this generation's VMEM (96 MiB on v5e/v6e, 48 MiB on v7x)."""
    try:
        cap = int(pltpu.get_tpu_info().vmem_capacity_bytes)
    except Exception:  # conservative fallback if the query is unavailable
        cap = 64 * 1024 * 1024
    return max(32 * 1024 * 1024, min(cap * 3 // 4, 100 * 1024 * 1024))


# ---------------------------------------------------------------------------
# Kernel 1: fused per-head Q/K/V projection, written head-major to HBM.
# Grid: (B, S // ts, H).  The x-tile block index does not depend on h (the
# innermost axis), so the same (ts, D) activation block is reused across all
# heads without re-DMA; each head's weights are small (D, dk)/(D, D) blocks.
# ---------------------------------------------------------------------------
def _qkv_proj_kernel(x_ref, wq_ref, bq_ref, wk_ref, bk_ref, wv_ref, bv_ref,
                     q_ref, k_ref, v_ref, *, scale, compute_dtype):
    x = x_ref[0].astype(compute_dtype)                                  # (ts, D)
    q = jnp.dot(x, wq_ref[0], preferred_element_type=jnp.float32) + bq_ref[0]
    k = jnp.dot(x, wk_ref[0], preferred_element_type=jnp.float32) + bk_ref[0]
    v = jnp.dot(x, wv_ref[0], preferred_element_type=jnp.float32) + bv_ref[0]
    q_ref[0, 0] = (q * scale).astype(q_ref.dtype)      # pre-scale by 1/sqrt(dk)
    k_ref[0, 0] = k.astype(k_ref.dtype)
    v_ref[0, 0] = v.astype(v_ref.dtype)


# ---------------------------------------------------------------------------
# Kernel 2: flash attention (online softmax over KV tiles) + fused output
# projection.  Grid: (B, S // tq, S // tk) with the KV axis innermost
# ("arbitrary"); m/l/acc live in VMEM scratch across it.
# ---------------------------------------------------------------------------
def _flash_attn_kernel(q_ref, k_ref, v_ref, wo_ref, bo_ref, out_ref,
                       m_scr, l_scr, acc_scr, *, compute_dtype):
    kv = pl.program_id(2)

    @pl.when(kv == 0)
    def _init():
        m_scr[...] = jnp.full_like(m_scr, -jnp.inf)
        l_scr[...] = jnp.zeros_like(l_scr)
        acc_scr[...] = jnp.zeros_like(acc_scr)

    q = q_ref[0]                                                   # (H, tq, dk)
    k = k_ref[0]                                                   # (H, tk, dk)
    v = v_ref[0]                                                   # (H, tk, D)

    # Batched over heads; contracts dk of both operands (no K^T materialized).
    s = jnp.einsum('hqd,hkd->hqk', q, k,
                   preferred_element_type=jnp.float32)             # (H, tq, tk)

    m_prev = m_scr[...]                                            # (H, tq, 1)
    m_new = jnp.maximum(m_prev, jnp.max(s, axis=-1, keepdims=True))
    alpha = jnp.exp(m_prev - m_new)
    p = jnp.exp(s - m_new)                                         # (H, tq, tk)
    l_scr[...] = alpha * l_scr[...] + jnp.sum(p, axis=-1, keepdims=True)
    acc_scr[...] = alpha * acc_scr[...] + jnp.einsum(
        'hqk,hkd->hqd', p.astype(compute_dtype), v,
        preferred_element_type=jnp.float32)                        # (H, tq, D)
    m_scr[...] = m_new

    @pl.when(kv == pl.num_programs(2) - 1)
    def _finish():
        inv_l = pl.reciprocal(l_scr[...], approx=True)             # EUP
        z = (acc_scr[...] * inv_l).astype(compute_dtype)           # (H, tq, D)
        # Output projection: one batched matmul + leading-axis sum
        # (no concat, no per-head unrolled value accumulator).
        zo = jnp.einsum('hqd,hde->hqe', z, wo_ref[...],
                        preferred_element_type=jnp.float32)        # (H, tq, D)
        out_ref[0] = (jnp.sum(zo, axis=0) + bo_ref[...]).astype(out_ref.dtype)


def multi_head_self_attention(x, params, *, n_heads, d_key,
                              block_q=256, block_k=256, block_proj=256,
                              compute_dtype=jnp.bfloat16):
    """x: (B, S, d_model). params in the per-head layout of the reference:
       wq (H,D,dk), bq (H,1,dk), wk (H,D,dk), bk (H,1,dk),
       wv (H,D,D),  bv (H,1,D),  wo (H*D,D),  bo (1,D)."""
    B, S, D = x.shape
    H, dk = n_heads, d_key
    wq, bq, wk, bk, wv, bv, wo, bo = params

    cdt = compute_dtype
    # One-time wrapper-side casts: bf16 weights feed the MXU (halved VMEM/HBM
    # traffic); biases stay f32 and are added to the f32 accumulators.
    wq_c, wk_c, wv_c = wq.astype(cdt), wk.astype(cdt), wv.astype(cdt)
    bq_f = bq.astype(jnp.float32)
    bk_f = bk.astype(jnp.float32)
    bv_f = bv.astype(jnp.float32)
    wo_h = wo.reshape(H, D, D).astype(cdt)   # head-major row blocks of (H*D, D)
    bo_f = bo.astype(jnp.float32)

    ts = min(block_proj, S)
    tq = min(block_q, S)
    tk = min(block_k, S)
    assert S % ts == 0 and S % tq == 0 and S % tk == 0, \
        "sequence length must divide the tile sizes"

    vmem_limit = _default_vmem_limit_bytes()
    scale = 1.0 / math.sqrt(dk)

    # ---- Stage 1: project Q/K/V once (head-major); never recomputed. -------
    proj_kernel = functools.partial(_qkv_proj_kernel, scale=scale,
                                    compute_dtype=cdt)
    # TODO(synk): set pipeline_mode=pl.Buffered(1) on the constant weight/bias
    # BlockSpecs (here and below) once single-buffer pipeline_mode is verified
    # on the target jax build; it halves weight-resident VMEM.
    q_hm, k_hm, v_hm = pl.pallas_call(
        proj_kernel,
        out_shape=(
            jax.ShapeDtypeStruct((B, H, S, dk), cdt),
            jax.ShapeDtypeStruct((B, H, S, dk), cdt),
            jax.ShapeDtypeStruct((B, H, S, D), cdt),
        ),
        grid_spec=pltpu.PrefetchScalarGridSpec(
            num_scalar_prefetch=0,
            grid=(B, S // ts, H),
            in_specs=[
                pl.BlockSpec((1, ts, D), lambda b, si, h: (b, si, 0)),   # x
                pl.BlockSpec((1, D, dk), lambda b, si, h: (h, 0, 0)),    # Wq[h]
                pl.BlockSpec((1, 1, dk), lambda b, si, h: (h, 0, 0)),    # bq[h]
                pl.BlockSpec((1, D, dk), lambda b, si, h: (h, 0, 0)),    # Wk[h]
                pl.BlockSpec((1, 1, dk), lambda b, si, h: (h, 0, 0)),    # bk[h]
                pl.BlockSpec((1, D, D), lambda b, si, h: (h, 0, 0)),     # Wv[h]
                pl.BlockSpec((1, 1, D), lambda b, si, h: (h, 0, 0)),     # bv[h]
            ],
            out_specs=[
                pl.BlockSpec((1, 1, ts, dk), lambda b, si, h: (b, h, si, 0)),
                pl.BlockSpec((1, 1, ts, dk), lambda b, si, h: (b, h, si, 0)),
                pl.BlockSpec((1, 1, ts, D), lambda b, si, h: (b, h, si, 0)),
            ],
        ),
        compiler_params=pltpu.CompilerParams(
            dimension_semantics=("parallel", "parallel", "arbitrary"),
            vmem_limit_bytes=vmem_limit,
        ),
    )(x, wq_c, bq_f, wk_c, bk_f, wv_c, bv_f)

    # ---- Stage 2: flash attention + fused output projection. ---------------
    attn_kernel = functools.partial(_flash_attn_kernel, compute_dtype=cdt)
    # TODO(synk): for very large H*D on v7x (64 MiB VMEM), stream Wo in
    # D-chunks over an extra 'arbitrary' grid axis (or split the output
    # projection into its own pallas_call) instead of keeping it resident.
    return pl.pallas_call(
        attn_kernel,
        out_shape=jax.ShapeDtypeStruct((B, S, D), x.dtype),
        grid_spec=pltpu.PrefetchScalarGridSpec(
            num_scalar_prefetch=0,
            grid=(B, S // tq, S // tk),
            in_specs=[
                pl.BlockSpec((1, H, tq, dk), lambda b, qi, ki: (b, 0, qi, 0)),
                pl.BlockSpec((1, H, tk, dk), lambda b, qi, ki: (b, 0, ki, 0)),
                pl.BlockSpec((1, H, tk, D), lambda b, qi, ki: (b, 0, ki, 0)),
                pl.BlockSpec((H, D, D), lambda b, qi, ki: (0, 0, 0)),    # Wo
                pl.BlockSpec((1, D), lambda b, qi, ki: (0, 0)),          # bo
            ],
            out_specs=pl.BlockSpec((1, tq, D), lambda b, qi, ki: (b, qi, 0)),
            scratch_shapes=[
                pltpu.VMEM((H, tq, 1), jnp.float32),   # running max  m
                pltpu.VMEM((H, tq, 1), jnp.float32),   # running sum  l
                pltpu.VMEM((H, tq, D), jnp.float32),   # running unnormalized z
            ],
        ),
        compiler_params=pltpu.CompilerParams(
            dimension_semantics=("parallel", "parallel", "arbitrary"),
            vmem_limit_bytes=vmem_limit,
        ),
    )(q_hm, k_hm, v_hm, wo_h, bo_f)


def reference(x, params, *, n_heads, d_key):
    wq, bq, wk, bk, wv, bv, wo, bo = params
    zs = []
    for h in range(n_heads):
        q = x @ wq[h] + bq[h]
        k = x @ wk[h] + bk[h]
        v = x @ wv[h] + bv[h]
        a = q @ jnp.swapaxes(k, -2, -1) / math.sqrt(d_key)
        a = jax.nn.softmax(a, axis=-1)
        zs.append(a @ v)
    z_cat = jnp.concatenate(zs, axis=-1)
    return z_cat @ wo + bo


if __name__ == "__main__":
    B, S, d_model, d_key, n_heads = 2, 8, 32, 16, 4

    key = jax.random.PRNGKey(0)
    ks = jax.random.split(key, 9)
    w_scale = 0.1
    wq = w_scale * jax.random.normal(ks[0], (n_heads, d_model, d_key), jnp.float32)
    bq = w_scale * jax.random.normal(ks[1], (n_heads, 1, d_key), jnp.float32)
    wk = w_scale * jax.random.normal(ks[2], (n_heads, d_model, d_key), jnp.float32)
    bk = w_scale * jax.random.normal(ks[3], (n_heads, 1, d_key), jnp.float32)
    wv = w_scale * jax.random.normal(ks[4], (n_heads, d_model, d_model), jnp.float32)
    bv = w_scale * jax.random.normal(ks[5], (n_heads, 1, d_model), jnp.float32)
    wo = w_scale * jax.random.normal(ks[6], (n_heads * d_model, d_model), jnp.float32)
    bo = w_scale * jax.random.normal(ks[7], (1, d_model), jnp.float32)
    params = (wq, bq, wk, bk, wv, bv, wo, bo)

    x = jax.random.normal(ks[8], (B, S, d_model), jnp.float32)

    ref = reference(x, params, n_heads=n_heads, d_key=d_key)

    # Performance default: bf16 MXU operands, f32 accumulation.
    out = multi_head_self_attention(x, params, n_heads=n_heads, d_key=d_key)
    out = jax.block_until_ready(out)
    assert out.shape == (B, S, d_model)
    assert jnp.allclose(out, ref, atol=2e-2, rtol=2e-2), "bf16 mismatch vs reference"

    # Tight numerical check of the algorithm itself with f32 MXU operands.
    out_f32 = multi_head_self_attention(x, params, n_heads=n_heads, d_key=d_key,
                                        compute_dtype=jnp.float32)
    out_f32 = jax.block_until_ready(out_f32)
    assert jnp.allclose(out_f32, ref, atol=2e-3, rtol=2e-3), "f32 mismatch vs reference"

    print("KERNEL_OK")
</pallas_src>

<mosaic_0001>
module attributes {stable_mosaic.version = 11 : i64} {
  func.func @_qkv_proj_kernel(%arg0: i32, %arg1: i32, %arg2: i32, %arg3: memref<1x8x32xf32, #tpu.memory_space<vmem>>, %arg4: memref<1x32x16xbf16, #tpu.memory_space<vmem>>, %arg5: memref<1x1x16xf32, #tpu.memory_space<vmem>>, %arg6: memref<1x32x16xbf16, #tpu.memory_space<vmem>>, %arg7: memref<1x1x16xf32, #tpu.memory_space<vmem>>, %arg8: memref<1x32x32xbf16, #tpu.memory_space<vmem>>, %arg9: memref<1x1x32xf32, #tpu.memory_space<vmem>>, %arg10: memref<1x1x8x16xbf16, #tpu.memory_space<vmem>>, %arg11: memref<1x1x8x16xbf16, #tpu.memory_space<vmem>>, %arg12: memref<1x1x8x32xbf16, #tpu.memory_space<vmem>>) attributes {dimension_semantics = [#tpu.dimension_semantics<parallel>, #tpu.dimension_semantics<parallel>, #tpu.dimension_semantics<arbitrary>], iteration_bounds = array<i64: 2, 1, 4>, scalar_prefetch = 0 : i64, scratch_operands = 0 : i64, tpu.core_type = #tpu.core_type<tc>, window_params = [{transform_indices = @transform_0, window_bounds = array<i64: 1, 8, 32>}, {transform_indices = @transform_1, window_bounds = array<i64: 1, 32, 16>}, {transform_indices = @transform_2, window_bounds = array<i64: 1, 1, 16>}, {transform_indices = @transform_3, window_bounds = array<i64: 1, 32, 16>}, {transform_indices = @transform_4, window_bounds = array<i64: 1, 1, 16>}, {transform_indices = @transform_5, window_bounds = array<i64: 1, 32, 32>}, {transform_indices = @transform_6, window_bounds = array<i64: 1, 1, 32>}, {transform_indices = @transform_7, window_bounds = array<i64: 1, 1, 8, 16>}, {transform_indices = @transform_8, window_bounds = array<i64: 1, 1, 8, 16>}, {transform_indices = @transform_9, window_bounds = array<i64: 1, 1, 8, 32>}]} {
    %c0 = arith.constant 0 : index
    %c0_0 = arith.constant 0 : index
    %c0_1 = arith.constant 0 : index
    %0 = vector.load %arg3[%c0, %c0_0, %c0_1] : memref<1x8x32xf32, #tpu.memory_space<vmem>>, vector<1x8x32xf32>
    %1 = vector.shape_cast %0 : vector<1x8x32xf32> to vector<8x32xf32>
    %2 = arith.truncf %1 : vector<8x32xf32> to vector<8x32xbf16>
    %c0_2 = arith.constant 0 : index
    %c0_3 = arith.constant 0 : index
    %c0_4 = arith.constant 0 : index
    %3 = vector.load %arg4[%c0_2, %c0_3, %c0_4] : memref<1x32x16xbf16, #tpu.memory_space<vmem>>, vector<1x32x16xbf16>
    %4 = vector.shape_cast %3 : vector<1x32x16xbf16> to vector<32x16xbf16>
    %cst = arith.constant dense<0.000000e+00> : vector<8x16xf32>
    %5 = tpu.matmul %2, %4, %cst {dimension_numbers = #tpu.dot_dimension_numbers<[1], [0], [0], [1], [0, 0, 1, 1], [], []>} : vector<8x32xbf16>, vector<32x16xbf16>, vector<8x16xf32> -> vector<8x16xf32>
    %c0_5 = arith.constant 0 : index
    %c0_6 = arith.constant 0 : index
    %c0_7 = arith.constant 0 : index
    %6 = vector.load %arg5[%c0_5, %c0_6, %c0_7] : memref<1x1x16xf32, #tpu.memory_space<vmem>>, vector<1x1x16xf32>
    %7 = vector.shape_cast %6 : vector<1x1x16xf32> to vector<1x16xf32>
    %8 = vector.broadcast %7 : vector<1x16xf32> to vector<8x16xf32>
    %9 = arith.addf %5, %8 : vector<8x16xf32>
    %c0_8 = arith.constant 0 : index
    %c0_9 = arith.constant 0 : index
    %c0_10 = arith.constant 0 : index
    %10 = vector.load %arg6[%c0_8, %c0_9, %c0_10] : memref<1x32x16xbf16, #tpu.memory_space<vmem>>, vector<1x32x16xbf16>
    %11 = vector.shape_cast %10 : vector<1x32x16xbf16> to vector<32x16xbf16>
    %cst_11 = arith.constant dense<0.000000e+00> : vector<8x16xf32>
    %12 = tpu.matmul %2, %11, %cst_11 {dimension_numbers = #tpu.dot_dimension_numbers<[1], [0], [0], [1], [0, 0, 1, 1], [], []>} : vector<8x32xbf16>, vector<32x16xbf16>, vector<8x16xf32> -> vector<8x16xf32>
    %c0_12 = arith.constant 0 : index
    %c0_13 = arith.constant 0 : index
    %c0_14 = arith.constant 0 : index
    %13 = vector.load %arg7[%c0_12, %c0_13, %c0_14] : memref<1x1x16xf32, #tpu.memory_space<vmem>>, vector<1x1x16xf32>
    %14 = vector.shape_cast %13 : vector<1x1x16xf32> to vector<1x16xf32>
    %15 = vector.broadcast %14 : vector<1x16xf32> to vector<8x16xf32>
    %16 = arith.addf %12, %15 : vector<8x16xf32>
    %c0_15 = arith.constant 0 : index
    %c0_16 = arith.constant 0 : index
    %c0_17 = arith.constant 0 : index
    %17 = vector.load %arg8[%c0_15, %c0_16, %c0_17] : memref<1x32x32xbf16, #tpu.memory_space<vmem>>, vector<1x32x32xbf16>
    %18 = vector.shape_cast %17 : vector<1x32x32xbf16> to vector<32x32xbf16>
    %cst_18 = arith.constant dense<0.000000e+00> : vector<8x32xf32>
    %19 = tpu.matmul %2, %18, %cst_18 {dimension_numbers = #tpu.dot_dimension_numbers<[1], [0], [0], [1], [0, 0, 1, 1], [], []>} : vector<8x32xbf16>, vector<32x32xbf16>, vector<8x32xf32> -> vector<8x32xf32>
    %c0_19 = arith.constant 0 : index
    %c0_20 = arith.constant 0 : index
    %c0_21 = arith.constant 0 : index
    %20 = vector.load %arg9[%c0_19, %c0_20, %c0_21] : memref<1x1x32xf32, #tpu.memory_space<vmem>>, vector<1x1x32xf32>
    %21 = vector.shape_cast %20 : vector<1x1x32xf32> to vector<1x32xf32>
    %22 = vector.broadcast %21 : vector<1x32xf32> to vector<8x32xf32>
    %23 = arith.addf %19, %22 : vector<8x32xf32>
    %cst_22 = arith.constant 2.500000e-01 : f32
    %24 = vector.broadcast %cst_22 : f32 to vector<8x16xf32>
    %25 = arith.mulf %9, %24 : vector<8x16xf32>
    %26 = arith.truncf %25 : vector<8x16xf32> to vector<8x16xbf16>
    %c0_23 = arith.constant 0 : index
    %c0_24 = arith.constant 0 : index
    %c0_25 = arith.constant 0 : index
    %c0_26 = arith.constant 0 : index
    %27 = vector.load %arg10[%c0_23, %c0_24, %c0_25, %c0_26] : memref<1x1x8x16xbf16, #tpu.memory_space<vmem>>, vector<1x1x8x16xbf16>
    %28 = vector.shape_cast %27 : vector<1x1x8x16xbf16> to vector<8x16xbf16>
    %29 = vector.shape_cast %26 : vector<8x16xbf16> to vector<1x1x8x16xbf16>
    tpu.vector_store %arg10[%c0_23, %c0_24, %c0_25, %c0_26], %29 {strides = array<i32>} : memref<1x1x8x16xbf16, #tpu.memory_space<vmem>>, vector<1x1x8x16xbf16>,
    %30 = arith.truncf %16 : vector<8x16xf32> to vector<8x16xbf16>
    %c0_27 = arith.constant 0 : index
    %c0_28 = arith.constant 0 : index
    %c0_29 = arith.constant 0 : index
    %c0_30 = arith.constant 0 : index
    %31 = vector.load %arg11[%c0_27, %c0_28, %c0_29, %c0_30] : memref<1x1x8x16xbf16, #tpu.memory_space<vmem>>, vector<1x1x8x16xbf16>
    %32 = vector.shape_cast %31 : vector<1x1x8x16xbf16> to vector<8x16xbf16>
    %33 = vector.shape_cast %30 : vector<8x16xbf16> to vector<1x1x8x16xbf16>
    tpu.vector_store %arg11[%c0_27, %c0_28, %c0_29, %c0_30], %33 {strides = array<i32>} : memref<1x1x8x16xbf16, #tpu.memory_space<vmem>>, vector<1x1x8x16xbf16>,
    %34 = arith.truncf %23 : vector<8x32xf32> to vector<8x32xbf16>
    %c0_31 = arith.constant 0 : index
    %c0_32 = arith.constant 0 : index
    %c0_33 = arith.constant 0 : index
    %c0_34 = arith.constant 0 : index
    %35 = vector.load %arg12[%c0_31, %c0_32, %c0_33, %c0_34] : memref<1x1x8x32xbf16, #tpu.memory_space<vmem>>, vector<1x1x8x32xbf16>
    %36 = vector.shape_cast %35 : vector<1x1x8x32xbf16> to vector<8x32xbf16>
    %37 = vector.shape_cast %34 : vector<8x32xbf16> to vector<1x1x8x32xbf16>
    tpu.vector_store %arg12[%c0_31, %c0_32, %c0_33, %c0_34], %37 {strides = array<i32>} : memref<1x1x8x32xbf16, #tpu.memory_space<vmem>>, vector<1x1x8x32xbf16>,
    return
  }
  func.func @transform_0(%arg0: i32, %arg1: i32, %arg2: i32) -> (i32, i32, i32) {
    %c0_i32 = arith.constant 0 : i32
    %c0_i32_0 = arith.constant 0 : i32
    return %arg0, %arg1, %c0_i32 : i32, i32, i32
  }
  func.func @transform_1(%arg0: i32, %arg1: i32, %arg2: i32) -> (i32, i32, i32) {
    %c0_i32 = arith.constant 0 : i32
    %c0_i32_0 = arith.constant 0 : i32
    %c0_i32_1 = arith.constant 0 : i32
    return %arg2, %c0_i32, %c0_i32_0 : i32, i32, i32
  }
  func.func @transform_2(%arg0: i32, %arg1: i32, %arg2: i32) -> (i32, i32, i32) {
    %c0_i32 = arith.constant 0 : i32
    %c0_i32_0 = arith.constant 0 : i32
    %c0_i32_1 = arith.constant 0 : i32
    return %arg2, %c0_i32, %c0_i32_0 : i32, i32, i32
  }
  func.func @transform_3(%arg0: i32, %arg1: i32, %arg2: i32) -> (i32, i32, i32) {
    %c0_i32 = arith.constant 0 : i32
    %c0_i32_0 = arith.constant 0 : i32
    %c0_i32_1 = arith.constant 0 : i32
    return %arg2, %c0_i32, %c0_i32_0 : i32, i32, i32
  }
  func.func @transform_4(%arg0: i32, %arg1: i32, %arg2: i32) -> (i32, i32, i32) {
    %c0_i32 = arith.constant 0 : i32
    %c0_i32_0 = arith.constant 0 : i32
    %c0_i32_1 = arith.constant 0 : i32
    return %arg2, %c0_i32, %c0_i32_0 : i32, i32, i32
  }
  func.func @transform_5(%arg0: i32, %arg1: i32, %arg2: i32) -> (i32, i32, i32) {
    %c0_i32 = arith.constant 0 : i32
    %c0_i32_0 = arith.constant 0 : i32
    %c0_i32_1 = arith.constant 0 : i32
    return %arg2, %c0_i32, %c0_i32_0 : i32, i32, i32
  }
  func.func @transform_6(%arg0: i32, %arg1: i32, %arg2: i32) -> (i32, i32, i32) {
    %c0_i32 = arith.constant 0 : i32
    %c0_i32_0 = arith.constant 0 : i32
    %c0_i32_1 = arith.constant 0 : i32
    return %arg2, %c0_i32, %c0_i32_0 : i32, i32, i32
  }
  func.func @transform_7(%arg0: i32, %arg1: i32, %arg2: i32) -> (i32, i32, i32, i32) {
    %c0_i32 = arith.constant 0 : i32
    %c0_i32_0 = arith.constant 0 : i32
    return %arg0, %arg2, %arg1, %c0_i32 : i32, i32, i32, i32
  }
  func.func @transform_8(%arg0: i32, %arg1: i32, %arg2: i32) -> (i32, i32, i32, i32) {
    %c0_i32 = arith.constant 0 : i32
    %c0_i32_0 = arith.constant 0 : i32
    return %arg0, %arg2, %arg1, %c0_i32 : i32, i32, i32, i32
  }
  func.func @transform_9(%arg0: i32, %arg1: i32, %arg2: i32) -> (i32, i32, i32, i32) {
    %c0_i32 = arith.constant 0 : i32
    %c0_i32_0 = arith.constant 0 : i32
    return %arg0, %arg2, %arg1, %c0_i32 : i32, i32, i32, i32
  }
}

</mosaic_0001>

<bundles_post_ra>
// kernel: tpu_custom_call.1
= control target key start
LH: loop header
LB: loop body
LE: loop exit
PB: predicated region body
PF: predicated region fallthrough
CT: control target
= control target key end

     0   :  { %15 = vsyncpa [#allocation3], 0  ;;  %s1587_s0 = inlined_call_operand.vmem [shape: f32[2,8,32], index: 0, kind: input, shape index: {}]   ;;  %s1588_s1 = inlined_call_operand.vmem [shape: bf16[4,32,16], index: 1, kind: input, shape index: {}]   ;;  %s1589_s2 = inlined_call_operand.vmem [shape: f32[4,1,16], index: 2, kind: input, shape index: {}]   ;;  %s1590_s3 = inlined_call_operand.vmem [shape: bf16[4,32,16], index: 3, kind: input, shape index: {}]   ;;  %s1591_s4 = inlined_call_operand.vmem [shape: f32[4,1,16], index: 4, kind: input, shape index: {}]   ;;  %s1592_s5 = inlined_call_operand.vmem [shape: bf16[4,32,32], index: 5, kind: input, shape index: {}]   ;;  %s1593_s6 = inlined_call_operand.vmem [shape: f32[4,1,32], index: 6, kind: input, shape index: {}]   ;;  %s1594_s7 = inlined_call_operand.hbm [shape: bf16[2,4,8,16], index: 7, kind: output, shape index: {0}]   ;;  %s1595_s8 = inlined_call_operand.hbm [shape: bf16[2,4,8,16], index: 8, kind: output, shape index: {1}]   ;;  %s1596_s9 = inlined_call_operand.hbm [shape: bf16[2,4,8,32], index: 9, kind: output, shape index: {2}]  }
   0x1   :  { %17 = vsyncpa [#allocation3 + $0x1], 0 }
   0x2   :  { %18 = vsyncpa [#allocation5], 0 }
   0x3   :  { %20 = vsyncpa [#allocation5 + $0x1], 0  ;;  %s1337_s30 = smov 0   ;;  %s1339_s10 = smov 0  }
   0x4   :  { %s1341_s11 = smov 0   ;;  %s1343_s12 = smov 0  }
   0x5   :  { %s1345_s13 = smov 0   ;;  %s1347_s14 = smov 0  }
   0x6   :  { %s1349_s15 = smov 0   ;;  %s1351_s16 = smov 0  }
   0x7 LB: > { %1607 = sst [smem:[#allocation9_spill]] %s1252_s30  ;;  %s1598_s17 = sadd.s32 4294967295, %s1280_s16   ;;  %s1280_s16 = sphi %s1351_s16, %s26_s16   ;;  %s1276_s15 = sphi %s1349_s15, %s1627_s15   ;;  %s1272_s14 = sphi %s1347_s14, %s1626_s14   ;;  %s1268_s13 = sphi %s1345_s13, %s1625_s13   ;;  %s1264_s12 = sphi %s1343_s12, %s1624_s12   ;;  %s1260_s11 = sphi %s1341_s11, %s1623_s11   ;;  %s1256_s10 = sphi %s1339_s10, %s1629_s10   ;;  %s1252_s30 = sphi %s1337_s30, %s1628_s30  }
   0x8   : > { %1608 = sst [smem:[#allocation10_spill]] %s1260_s11  ;;  %s1597_s18 = sadd.s32 4294967294, %s1280_s16  }
   0x9   : > { %1609 = sst [smem:[#allocation11_spill]] %s1272_s14  ;;  %s38_s19 = sadd.s32 1, %s1272_s14 }
   0xa   : > { %1610 = sst [smem:[#allocation12_spill]] %s1276_s15  ;;  %p39_p0 = scmp.ge.s32.totalorder %s38_s19, 4 }
   0xb   : > { %s45_s20 = sadd.s32 1, %s1276_s15  ;;  %p250_p1 = scmp.ne.s32.totalorder %s1260_s11, %s1256_s10 }
   0xc   : > { %p251_p2 = scmp.eq.s32.totalorder %s1598_s17, 7  ;;  %s1631_s19 = smov (%p39_p0, %s38_s19), 0 }
   0xd   : > { %1611 = sst [smem:[#allocation13_spill]] %s1631_s19  ;;  %s1633_s20 = smov (!%p39_p0, %s45_s20), %s1276_s15 }
   0xe   : > { %s234_s21 = ssub.s32 %s1272_s14, %s1631_s19  ;;  %p1390_p3 = por %p251_p2, %p250_p1 }
   0xf   : > { %p47_p4 = scmp.ge.s32.totalorder %s1633_s20, 2  ;;  %p256_p5 = scmp.ne.s32.totalorder %s1256_s10, %s1252_s30 }
  0x10   : > { %p257_p6 = scmp.eq.s32.totalorder %s1597_s18, 7  ;;  %p967_p7 = scmp.ge.s32.totalorder %s1280_s16, 1 }
  0x11   : > { %s1635_s20 = smov (%p47_p4, %s1633_s20), 0  ;;  %p387_p9 = scmp.lt.s32.totalorder %s1280_s16, 9 }
  0x12   : > { %1613 = sst [smem:[#allocation14_spill]] %s1635_s20  ;;  %p1401_p8 = por %p257_p6, %p256_p5 }
  0x13   : > { %s233_s24 = ssub.s32 %s1276_s15, %s1635_s20  ;;  %s240_s25 = sadd.s32 1, %s1260_s11 }
  0x14   : > { %s1614_s23 = scalar_select %p1401_p8, 1, 0 }
  0x15   : > { %s235_s26 = sor.u32 %s234_s21, %s233_s24  ;;  %p388_p10 = pnand %p967_p7, %p387_p9 }
  0x16   : > { %1615 = sst [smem:[#allocation15_spill]] %s1614_s23  ;;  %p238_p11 = scmp.eq.s32.totalorder %s235_s26, 0  ;;  %v1282_v0 = vmov (!%p388_p10), 0.0   ;;  %vm1283_vm0 = vmmov (!%p388_p10), 0   ;;  %vm516_vm1 = vcmask (!%p388_p10), 261120   ;;  %vm688_vm2 = vcmask (!%p388_p10), 125952  }
  0x17   : > { %391 = sbr.rel (%p388_p10) target bundleno = 321 (0x141), region = 48  ;;  %p466_p12 = scmp.lt.s32.totalorder (!%p388_p10), %s1264_s12, 3  ;;  %1013 = vmatprep.subr.bf16.mxu0 (!%p388_p10), %v1282_v0  ;;  %1021 = vmatprep.subr.bf16.mxu1 (!%p388_p10), %v1282_v0 }
  0x18   : > { %s1410_s27 = scalar_select %p238_p11, %s1260_s11, %s240_s25  }
  0x19   : > { %p459_p13 = scmp.lt.s32.totalorder (!%p388_p10), %s1268_s13, 1  ;;  %1017 = vmatprep.mubr.msk.bf16.mxu0 (!%p388_p10), %vm1283_vm0, %v1282_v0  ;;  %1025 = vmatprep.mubr.msk.bf16.mxu1 (!%p388_p10), %vm1283_vm0, %v1282_v0  ;;  %s442_s17 = sand.u32 (!%p388_p10), 1, %s1256_s10  }
  0x1a   : > { %1616 = sst [smem:[#allocation16_spill]] %s1410_s27  ;;  %s993_s18 = sshll.u32 (!%p388_p10), %s1268_s13, 2 }
  0x1e   : > { %s1415_s28 = scalar_select %p466_p12, %s1264_s12, 3 }
  0x1f   : > { %s460_s29 = scalar_select %p459_p13, %s1268_s13, 1 }
  0x20   : > { %s1001_s21 = sshll.u32 %s1415_s28, 4  ;;  %s473_s15 = scalar_lea.vmem %s1589_s2, %s1415_s28 }
  0x21   : > { %s470_s26 = scalar_lea.vmem %s1588_s1, %s1001_s21  ;;  %s478_s20 = scalar_lea.vmem %s1590_s3, %s1001_s21  ;;  %v978_v9 = vld [vmem:[%s473_s15] ss:$0 sm:$0xff] }
  0x22   : > { %v1120_v1 = vld [vmem:[%s470_s26] sm:$0xff]   ;;  %s971_s19 = sshll.u32 %s460_s29, 3  ;;  %v1121_v2 = vld [vmem:[%s470_s26 + $0x8] sm:$0xff]   ;;  %s486_s30 = scalar_lea.vmem %s1592_s5, %s1001_s21 }
  0x23   : > { %s465_s27 = scalar_lea.vmem %s1587_s0, %s971_s19  ;;  %1014 = vmatpush3.bf16.msra.mxu0 %v1120_v1  ;;  %v1122_v3 = vld [vmem:[%s478_s20] sm:$0xff]   ;;  %v1124_v6 = vld [vmem:[%s478_s20 + $0x8] sm:$0xff]   ;;  %s481_s23 = scalar_lea.vmem %s1591_s4, %s1415_s28 }
  0x24   : > { %1015 = vmatprep.subr.bf16.mxu0 %v1282_v0  ;;  %v491_v4 = vld [vmem:[%s465_s27] sm:$0xff]  ;;  %1022 = vmatpush3.bf16.msra.mxu1 %v1122_v3  ;;  %v1125_v8 = vld [vmem:[%s486_s30 + $0x8] sm:$0xff]   ;;  %s718_s27 = sadd.s32 %s1264_s12, %s993_s18  ;;  %s1617_s29 = sadd.s32 4294967295, %s1280_s16  }
  0x25   : > { %v492_v5 = vpack.c.bf16 %v491_v4, %v491_v4  ;;  %1023 = vmatprep.subr.bf16.mxu1 %v1282_v0  ;;  %v1123_v7 = vld [vmem:[%s486_s30] sm:$0xff]   ;;  %s1446_s30 = sshll.u32 %s442_s17, 2  ;;  %s1451_s21 = sand.u32 1, %s1617_s29  }
  0x26   : > { %v982_v11 = vld [vmem:[%s481_s23] ss:$0 sm:$0xff]  ;;  %s1453_s13 = sshll.u32 %s718_s27, 6  ;;  %s451_s24 = scalar_lea.vmem [#allocation4], %s1446_s30 }
  0x27   : > { %1016 = vmatpush3.bf16.msra.mxu0 %v1121_v2  ;;  %s738_s25 = sshll.u32 %s451_s24, 4  ;;  %s489_s11 = scalar_lea.vmem %s1593_s6, %s1415_s28  ;;  %s1467_s25 = int_to_ptr.vmem [resolvable:$true] %s738_s25 }
  0x28   : > { %1029 = vmatprep.subr.bf16.mxu0 %v1282_v0  ;;  %1024 = vmatpush3.bf16.msra.mxu1 %v1124_v6  ;;  %s444_s14 = scalar_lea.vmem [#allocation2], %s1446_s30  ;;  %s1465_s20 = scalar_lea.hbm %s1595_s8, %s1453_s13  ;;  %v986_v24 = vld [vmem:[%s489_s11] ss:$0 sm:$0xff] }
  0x29   : > { %s722_s15 = sshll.u32 %s444_s14, 4  ;;  %s1473_s27 = scalar_lea.hbm %s1594_s7, %s1453_s13  ;;  %s1475_s15 = int_to_ptr.vmem [resolvable:$true] %s722_s15 }
  0x2a   : > { %1018 = vmatmul.mubr.msk.bf16.vlgmr.msra.gmra.mrb[0].mxu0 %vm516_vm1, %v492_v5  ;;  %s1606_s29 = scalar_lea.vmem [#allocation6], %s1446_s30  ;;  %s701_s26 = scalar_lea.sflag [#allocation5], %s1451_s21 }
  0x2b   : > { %1030 = vmatpush3.bf16.msra.mxu0 %v1123_v7  ;;  %1033 = vmatprep.mubr.msk.bf16.mxu0 %vm1283_vm0, %v1282_v0  ;;  %s1480_s12 = sshll.u32 %s1606_s29, 4  ;;  %s1126_s18 = scalar_lea.vmem %s1467_s25, 64  ;;  %s755_s12 = int_to_ptr.vmem [resolvable:$true] %s1480_s12 }
  0x2c   : > { %1031 = vmatprep.subr.bf16.mxu0 %v1282_v0  ;;  %1026 = vmatmul.mubr.msk.bf16.vlgmr.msra.gmra.mrb[0].mxu1 %vm516_vm1, %v492_v5  ;;  %p1127_p0 = scmp.ne.s32.totalorder %s1467_s25, %s1126_s18  ;;  %s1284_s11 = smov [#allocation4]  }
  0x2d   : > { %s1130_s19 = sshll.u32 %s1284_s11, 4  ;;  %s1131_s19 = int_to_ptr.vmem [resolvable:$false] %s1130_s19 }
  0x2e   : > { %p1128_p1 = pnand %p1127_p0, %p1390_p3  ;;  %s1132_s28 = scalar_lea.vmem %s1131_s19, 128 }
  0x2f   : > { %1032 = vmatpush3.bf16.msra.mxu0 %v1125_v8  ;;  %p1133_p4 = scmp.lt.s32.totalorder %s1467_s25, %s1131_s19  ;;  %p1134_p5 = scmp.lt.s32.totalorder %s1132_s28, %s1126_s18 }
  0x30   : > { %p1129_p2 = pneg %p1128_p1 }
  0x31   : > { %p1135_p6 = por %p1134_p5, %p1133_p4 }
  0x32   : > { %1034 = vmatmul.mubr.msk.bf16.vlgmr.msra.gmra.mrb[4].mxu0 %vm516_vm1, %v492_v5 }
  0x33   : > { %p1136_p7 = pnand %p1135_p6, %p1129_p2 }
  0xfd   : > { %v554_v10 = vpop.f32.mrb[0].mxu0 }
  0xfe   : > { %v555_v12 = vadd.f32 %v978_v9, %v554_v10  ;;  %v1019_v13 = vpop.f32.mrb[1].mxu0 }
  0xff   : > { %v557_v14 = vpop.f32.mrb[2].mxu0  ;;  %v617_v15 = vpop.f32.mrb[0].mxu1 }
 0x100   : > { %v686_v16 = vmul.f32 0.25, %v555_v12  ;;  %v1020_v17 = vpop.f32.mrb[3].mxu0  ;;  %v618_v18 = vadd.f32 %v982_v11, %v617_v15  ;;  %v1027_v19 = vpop.f32.mrb[1].mxu1 }
 0x101   : > { %v620_v20 = vpop.f32.mrb[2].mxu1 }
 0x102   : > { %v687_v21 = vpack.c.bf16 %v686_v16, %v686_v16  ;;  %v690_v22 = vpack.c.bf16 %v618_v18, %v618_v18  ;;  %v1028_v23 = vpop.f32.mrb[3].mxu1 }
 0x104   : > { %691 = vst.msk [vmem:[%s451_s24] sm:$0xf] %vm688_vm2, %v690_v22  ;;  %689 = vst.msk [vmem:[%s444_s14] sm:$0xf] %vm688_vm2, %v687_v21 }
 0x105   : > { %v680_v25 = vpop.f32.mrb[4].mxu0 }
 0x106   : > { %1139 = shalt.err (!%p1136_p7)
}
 0x107   : > { %s1140_s24 = scalar_lea.hbm %s1465_s20, 64  ;;  %s1144_s11 = scalar_lea.hbm %s1595_s8, 512 }
 0x108   : > { %p1141_p9 = scmp.ne.s32.totalorder %s1465_s20, %s1140_s24  ;;  %p1145_p12 = scmp.lt.u32.totalorder %s1465_s20, %s1595_s8 }
 0x109   : > { %p1146_p13 = scmp.lt.u32.totalorder %s1144_s11, %s1140_s24  ;;  %p1148_p1 = scmp.lt.u32.totalorder %s1140_s24, %s1465_s20 }
 0x10a   : > { %p1142_p10 = pnand %p1141_p9, %p1390_p3 }
 0x10b   : > { %p1147_p0 = por %p1146_p13, %p1145_p12 }
 0x10c   : > { %p1143_p11 = pneg %p1142_p10 }
 0x10d   : > { %p1149_p2 = por %p1148_p1, %p1147_p0 }
 0x10f   : > { %p1150_p4 = pnand %p1149_p2, %p1143_p11 }
 0x111   : > { %1153 = shalt.err (!%p1150_p4)
}
 0x112   : > { %1038 = dma.vmem_to_hbm [thread:$0]  (%p1390_p3), %s1467_s25, 64, %s1465_s20, %s701_s26   ;;  %v681_v26 = vadd.f32 %v986_v24, %v680_v25  ;;  %v1035_v27 = vpop.f32.mrb[5].mxu0 }
 0x113   : > { %s696_s29 = scalar_lea.sflag [#allocation3], %s442_s17  ;;  %s1154_s18 = scalar_lea.vmem %s1475_s15, 64 }
 0x114   : > { %p1155_p5 = scmp.ne.s32.totalorder %s1475_s15, %s1154_s18  ;;  %s1285_s28 = smov [#allocation2]  }
 0x115   : > { %s1158_s24 = sshll.u32 %s1285_s28, 4  ;;  %s1159_s24 = int_to_ptr.vmem [resolvable:$false] %s1158_s24 }
 0x116   : > { %p1156_p6 = pnand %p1155_p5, %p1390_p3  ;;  %s1160_s14 = scalar_lea.vmem %s1159_s24, 128 }
 0x117   : > { %p1161_p9 = scmp.lt.s32.totalorder %s1475_s15, %s1159_s24  ;;  %p1162_p10 = scmp.lt.s32.totalorder %s1160_s14, %s1154_s18 }
 0x118   : > { %p1157_p7 = pneg %p1156_p6 }
 0x119   : > { %p1163_p11 = por %p1162_p10, %p1161_p9 }
 0x11b   : > { %p1164_p12 = pnand %p1163_p11, %p1157_p7 }
 0x11d   : > { %1167 = shalt.err (!%p1164_p12)
}
 0x11e   : > { %s1168_s17 = scalar_lea.hbm %s1473_s27, 64  ;;  %s1172_s23 = scalar_lea.hbm %s1594_s7, 512 }
 0x11f   : > { %p1169_p13 = scmp.ne.s32.totalorder %s1473_s27, %s1168_s17  ;;  %p1173_p2 = scmp.lt.u32.totalorder %s1473_s27, %s1594_s7 }
 0x120   : > { %p1174_p4 = scmp.lt.u32.totalorder %s1172_s23, %s1168_s17  ;;  %p1176_p6 = scmp.lt.u32.totalorder %s1168_s17, %s1473_s27 }
 0x121   : > { %p1170_p0 = pnand %p1169_p13, %p1390_p3 }
 0x122   : > { %p1175_p5 = por %p1174_p4, %p1173_p2 }
 0x123   : > { %p1171_p1 = pneg %p1170_p0 }
 0x124   : > { %p1177_p7 = por %p1176_p6, %p1175_p5 }
 0x126   : > { %p1178_p9 = pnand %p1177_p7, %p1171_p1 }
 0x128   : > { %1181 = shalt.err (!%p1178_p9)
}
 0x129   : > { %1037 = dma.vmem_to_hbm [thread:$0]  (%p1390_p3), %s1475_s15, 64, %s1473_s27, %s696_s29   ;;  %vm693_vm3 = vcmask 257024   ;;  %v683_v28 = vpop.f32.mrb[6].mxu0  ;;  %v692_v29 = vpack.c.bf16 %v681_v26, %v681_v26 }
 0x12a   : > { %v1036_v30 = vpop.f32.mrb[7].mxu0  ;;  %s1533_s24 = scalar_lea.hbm %s1596_s9, %s1453_s13  ;;  %s1618_s14 = scalar_lea.vmem [#allocation6], %s1446_s30 }
 0x12b   : > { %694 = vst.msk [vmem:[%s1618_s14] sm:$0xf] %vm693_vm3, %v692_v29  ;;  %s1182_s17 = scalar_lea.vmem %s755_s12, 64  ;;  %s1286_s25 = smov [#allocation6]  }
 0x12c   : > { %p1183_p10 = scmp.ne.s32.totalorder %s755_s12, %s1182_s17  ;;  %s1186_s20 = sshll.u32 %s1286_s25, 4  ;;  %s1187_s20 = int_to_ptr.vmem [resolvable:$false] %s1186_s20 }
 0x12d   : > { %s1188_s15 = scalar_lea.vmem %s1187_s20, 128  ;;  %p1189_p13 = scmp.lt.s32.totalorder %s755_s12, %s1187_s20 }
 0x12e   : > { %p1184_p11 = pnand %p1183_p10, %p1390_p3  ;;  %p1190_p0 = scmp.lt.s32.totalorder %s1188_s15, %s1182_s17 }
 0x130   : > { %p1185_p12 = pneg %p1184_p11  ;;  %p1191_p1 = por %p1190_p0, %p1189_p13 }
 0x132   : > { %p1192_p2 = pnand %p1191_p1, %p1185_p12 }
 0x134   : > { %1195 = shalt.err (!%p1192_p2)
}
 0x135   : > { %s1196_s30 = scalar_lea.hbm %s1533_s24, 64  ;;  %s1200_s29 = scalar_lea.hbm %s1596_s9, 512 }
 0x136   : > { %p1197_p4 = scmp.ne.s32.totalorder %s1533_s24, %s1196_s30  ;;  %p1201_p7 = scmp.lt.u32.totalorder %s1533_s24, %s1596_s9 }
 0x137   : > { %p1202_p9 = scmp.lt.u32.totalorder %s1200_s29, %s1196_s30  ;;  %p1204_p11 = scmp.lt.u32.totalorder %s1196_s30, %s1533_s24 }
 0x138   : > { %p1198_p5 = pnand %p1197_p4, %p1390_p3 }
 0x139   : > { %p1203_p10 = por %p1202_p9, %p1201_p7 }
 0x13a   : > { %p1199_p6 = pneg %p1198_p5 }
 0x13b   : > { %p1205_p12 = por %p1204_p11, %p1203_p10 }
 0x13d   : > { %p1206_p13 = pnand %p1205_p12, %p1199_p6 }
 0x13f   : > { %1209 = shalt.err (!%p1206_p13)
}
 0x140   : > { %1039 = dma.vmem_to_hbm [thread:$0]  (%p1390_p3), %s755_s12, 64, %s1533_s24, %s701_s26  }
 0x141 PF: > { %s1619_s19 = sld [smem:[#allocation9_spill]]  ;;  %p1053_p0 = scmp.ge.s32.totalorder %s1280_s16, 2 }
 0x143   : > { %p1044_p1 = pnand %p1053_p0, %p1401_p8 }
 0x147   : > { %s766_s28 = sand.u32 1, %s1619_s19  }
 0x148   : > { %s767_s14 = scalar_lea.sflag [#allocation3], %s766_s28 }
 0x149   : > { %1243 = dma.done.wait (!%p1044_p1), %s767_s14, 64  }
 0x14a   : > { %1245 = vsyncadd (!%p1044_p1), %s767_s14, 4294967232  ;;  %s1621_s17 = sadd.s32 4294967294, %s1280_s16  }
 0x14b   : > { %s775_s25 = sand.u32 1, %s1621_s17  }
 0x14c   : > { %s776_s20 = scalar_lea.sflag [#allocation5], %s775_s25 }
 0x14d   : > { %1247 = dma.done.wait (!%p1044_p1), %s776_s20, 128  }
 0x14e   : > { %1249 = vsyncadd (!%p1044_p1), %s776_s20, 4294967168  ;;  %s26_s16 = sadd.s32 1, %s1280_s16   ;;  %s1622_s22 = sld [smem:[#allocation10_spill]] }
 0x14f   : > { %p23_p3 = scmp.ge.s32.totalorder %s26_s16, 10   ;;  %s1623_s11 = sld [smem:[#allocation16_spill]] }
 0x150   : > { %s1624_s12 = sld [smem:[#allocation11_spill]]  ;;  %s1625_s13 = sld [smem:[#allocation12_spill]] }
 0x151   : > { %s1626_s14 = sld [smem:[#allocation13_spill]]  ;;  %s1627_s15 = sld [smem:[#allocation14_spill]] }
 0x152   : > { %s1628_s30 = smov %s1256_s10  ;;  %25 = sbr.rel (!%p23_p3) target bundleno = 7 (0x7), region = 133 }
 0x154   : > { %s1629_s10 = smov %s1622_s22 }
 0x159   :  { %790 = vsyncpa [#allocation3], 1 }
 0x15a   :  { %792 = vsyncpa [#allocation3 + $0x1], 1 }
 0x15b   :  { %793 = vsyncpa [#allocation5], 1 }
 0x15c   :  { %795 = vsyncpa [#allocation5 + $0x1], 1 }

</bundles_post_ra>
